<compile_context>
chip_gen: v5e
topology: v5e:2x2
jax: 0.10.0
libtpu: 0.0.40
codegen_flags: <defaults>
</compile_context>

<pallas_src>
import functools

import jax
import jax.numpy as jnp
from jax.experimental import pallas as pl
from jax.experimental.pallas import tpu as pltpu

_LANES = 128
_STRIP = 8          # sublanes per compute strip -> 1024 samples per strip


def _round_up(x, m):
    return ((x + m - 1) // m) * m


def lie_se3_kernel(uv_ref, out_ref, *, translation_scale, rotation_scale, eps):
    # uv_ref : (3,  S, 128)  rows = [x, y, p_yaw], batch on (sublane, lane)
    # out_ref: (16, S, 128)  row-major flattened 4x4 transform, batch on (sublane, lane)
    s_rows = out_ref.shape[1]
    n_strips = s_rows // _STRIP
    dt = out_ref.dtype

    zeros = jnp.zeros((_STRIP, _LANES), dt)
    ones = jnp.ones((_STRIP, _LANES), dt)

    @pl.loop(0, n_strips)
    def _(i):
        r0 = pl.multiple_of(i * _STRIP, _STRIP)
        sl = pl.ds(r0, _STRIP)

        u_x = uv_ref[0, sl, :] * translation_scale          # (8, 128)
        u_y = uv_ref[1, sl, :] * translation_scale
        w_z = uv_ref[2, sl, :] * rotation_scale              # (wx = wy = 0)

        theta_sqr = w_z * w_z
        theta = jnp.abs(w_z)                                 # == sqrt(theta_sqr)

        # 1/(theta^2+eps) and 1/(theta+eps): approx EUP reciprocal + 1 Newton step
        tse = theta_sqr + eps
        the = theta + eps
        inv_tsq = pl.reciprocal(tse, approx=True)
        inv_tsq = inv_tsq * (2.0 - tse * inv_tsq)
        inv_th = pl.reciprocal(the, approx=True)
        inv_th = inv_th * (2.0 - the * inv_th)

        a_coef = jnp.sin(theta) * inv_th                     # A = sin(t)/t
        b_coef = (1.0 - jnp.cos(theta)) * inv_tsq            # B = (1-cos t)/t^2
        c_coef = (1.0 - a_coef) * inv_tsq                    # C = (1-A)/t^2

        # skew = [[0,-wz,0],[wz,0,0],[0,0,0]];  skew^2 = diag(-wz^2,-wz^2,0)
        # R = I + A*skew + B*skew^2 ; V = I + B*skew + C*skew^2 ; t = V @ [ux,uy,0]
        r00 = 1.0 - b_coef * theta_sqr                       # == r11
        awz = a_coef * w_z
        v00 = 1.0 - c_coef * theta_sqr                       # == v11
        bwz = b_coef * w_z
        t0 = v00 * u_x - bwz * u_y
        t1 = bwz * u_x + v00 * u_y

        # 16 dense (8,128) row stores per strip -- the store minimum.
        out_ref[0, sl, :] = r00.astype(dt)        # [0,0]
        out_ref[1, sl, :] = (-awz).astype(dt)     # [0,1]
        out_ref[2, sl, :] = zeros                 # [0,2]
        out_ref[3, sl, :] = t0.astype(dt)         # [0,3]
        out_ref[4, sl, :] = awz.astype(dt)        # [1,0]
        out_ref[5, sl, :] = r00.astype(dt)        # [1,1] == [0,0]
        out_ref[6, sl, :] = zeros                 # [1,2]
        out_ref[7, sl, :] = t1.astype(dt)         # [1,3]
        out_ref[8, sl, :] = zeros                 # [2,0]
        out_ref[9, sl, :] = zeros                 # [2,1]
        out_ref[10, sl, :] = ones                 # [2,2]
        out_ref[11, sl, :] = zeros                # [2,3]
        out_ref[12, sl, :] = zeros                # [3,0]
        out_ref[13, sl, :] = zeros                # [3,1]
        out_ref[14, sl, :] = zeros                # [3,2]
        out_ref[15, sl, :] = ones                 # [3,3]


def org_lie_se3(uv, translation_scale=1.0, rotation_scale=0.1, eps=1e-5,
                block_b=32768, batch_last=False):
    """uv: (B, 3) -> (B, 4, 4) SE(3) transforms (float32).

    batch_last=True returns the kernel-native (16, B) layout (flattened
    row-major transform entries on the first axis) and skips the XLA-side
    transpose epilogue entirely.
    """
    uv = jnp.asarray(uv, jnp.float32)
    b = uv.shape[0]

    # Tile size: multiple of 1024 (sublane-dense blocks), big enough to
    # amortize per-grid-step overhead; split into >=2 tiles when possible so
    # the "parallel" grid axis can shard across both TensorCores on v7x.
    block_b = max(1024, (int(block_b) // 1024) * 1024)
    b_ceil = _round_up(b, 1024)
    n_tiles = max(1, pl.cdiv(b_ceil, block_b))
    if n_tiles == 1 and b_ceil >= 2048:
        n_tiles = 2
    tb = _round_up(pl.cdiv(b_ceil, n_tiles), 1024)
    b_pad = n_tiles * tb

    # (B,3) -> (3, B_pad//128, 128): transpose + pad + reshape fuse into one pass.
    uv_t = jnp.pad(uv.T, ((0, 0), (0, b_pad - b))).reshape(
        3, b_pad // _LANES, _LANES)

    kernel = functools.partial(
        lie_se3_kernel,
        translation_scale=float(translation_scale),
        rotation_scale=float(rotation_scale),
        eps=float(eps),
    )

    out = pl.pallas_call(
        kernel,
        out_shape=jax.ShapeDtypeStruct((16, b_pad // _LANES, _LANES), jnp.float32),
        grid=(n_tiles,),
        in_specs=[pl.BlockSpec((3, tb // _LANES, _LANES), lambda i: (0, i, 0))],
        out_specs=pl.BlockSpec((16, tb // _LANES, _LANES), lambda i: (0, i, 0)),
        compiler_params=pltpu.CompilerParams(
            dimension_semantics=("parallel",)),
    )(uv_t)

    if batch_last:
        return out.reshape(16, b_pad)[:, :b]
    # (16, B_pad//128, 128) -> (B, 4, 4): one fused XLA transpose/reshape.
    return out.transpose(1, 2, 0).reshape(b_pad, 16)[:b].reshape(b, 4, 4)


def org_lie_se3_ref(uv, translation_scale=1.0, rotation_scale=0.1, eps=1e-5):
    """Pure-JAX reference mirroring the PyTorch per-sample loop."""
    uv = uv.astype(jnp.float32)
    b = uv.shape[0]
    eye3 = jnp.eye(3, dtype=jnp.float32)

    def one(sample):
        w_z = sample[2] * rotation_scale
        u = jnp.array([sample[0] * translation_scale,
                       sample[1] * translation_scale, 0.0], jnp.float32)
        skew = jnp.array([[0.0, -w_z, 0.0],
                          [w_z, 0.0, 0.0],
                          [0.0, 0.0, 0.0]], jnp.float32)
        skew2 = skew @ skew
        theta_sqr = w_z * w_z
        theta = jnp.sqrt(theta_sqr)
        a = jnp.sin(theta) / (theta + eps)
        bb = (1.0 - jnp.cos(theta)) / (theta_sqr + eps)
        c = (1.0 - a) / (theta_sqr + eps)
        rot = eye3 + a * skew + bb * skew2
        v = eye3 + bb * skew + c * skew2
        t = v @ u
        m = jnp.zeros((4, 4), jnp.float32)
        m = m.at[:3, :3].set(rot)
        m = m.at[:3, 3].set(t)
        m = m.at[3, 3].set(1.0)
        return m

    return jax.vmap(one)(uv.reshape(b, 3))


if __name__ == "__main__":
    key = jax.random.PRNGKey(0)
    k1, k2 = jax.random.split(key)

    # Small batch (single tile, single strip).
    batch = 8
    uv = jax.random.normal(k1, (batch, 3), dtype=jnp.float32)
    out = org_lie_se3(uv)
    jax.block_until_ready(out)
    ref = org_lie_se3_ref(uv)
    assert out.shape == (batch, 4, 4)
    assert jnp.allclose(out, ref, atol=1e-5, rtol=1e-5)

    # Batch-last (epilogue-free) layout.
    out_bl = org_lie_se3(uv, batch_last=True)
    jax.block_until_ready(out_bl)
    assert out_bl.shape == (16, batch)
    assert jnp.allclose(out_bl.T.reshape(batch, 4, 4), ref, atol=1e-5, rtol=1e-5)

    # Multi-tile path: 2-step "parallel" grid, multiple strips, padded lanes.
    batch2 = 2100
    uv2 = jax.random.normal(k2, (batch2, 3), dtype=jnp.float32)
    out2 = org_lie_se3(uv2)
    jax.block_until_ready(out2)
    ref2 = org_lie_se3_ref(uv2)
    assert out2.shape == (batch2, 4, 4)
    assert jnp.allclose(out2, ref2, atol=1e-5, rtol=1e-5)

    print("KERNEL_OK")
</pallas_src>

<mosaic_0001>
module attributes {stable_mosaic.version = 11 : i64} {
  func.func @lie_se3_kernel(%arg0: i32, %arg1: memref<3x8x128xf32, #tpu.memory_space<vmem>>, %arg2: memref<16x8x128xf32, #tpu.memory_space<vmem>>) attributes {dimension_semantics = [#tpu.dimension_semantics<parallel>], iteration_bounds = array<i64: 1>, scalar_prefetch = 0 : i64, scratch_operands = 0 : i64, tpu.core_type = #tpu.core_type<tc>, window_params = [{transform_indices = @transform_0, window_bounds = array<i64: 3, 8, 128>}, {transform_indices = @transform_1, window_bounds = array<i64: 16, 8, 128>}]} {
    %cst = arith.constant 0.000000e+00 : f32
    %0 = vector.broadcast %cst : f32 to vector<8x128xf32>
    %cst_0 = arith.constant 1.000000e+00 : f32
    %1 = vector.broadcast %cst_0 : f32 to vector<8x128xf32>
    %c0_i32 = arith.constant 0 : i32
    %c1_i32 = arith.constant 1 : i32
    %2 = arith.muli %c0_i32, %c1_i32 : i32
    %c0_i32_1 = arith.constant 0 : i32
    %3 = arith.addi %c0_i32_1, %2 : i32
    %c8_i32 = arith.constant 8 : i32
    %4 = arith.muli %3, %c8_i32 : i32
    %5 = tpu.assume_multiple %4, 8 : i32
    %c0 = arith.constant 0 : index
    %6 = arith.index_cast %5 : i32 to index
    %c0_2 = arith.constant 0 : index
    %7 = vector.load %arg1[%c0, %6, %c0_2] : memref<3x8x128xf32, #tpu.memory_space<vmem>>, vector<1x8x128xf32>
    %8 = vector.shape_cast %7 : vector<1x8x128xf32> to vector<8x128xf32>
    %cst_3 = arith.constant 1.000000e+00 : f32
    %9 = vector.broadcast %cst_3 : f32 to vector<8x128xf32>
    %10 = arith.mulf %8, %9 : vector<8x128xf32>
    %c1 = arith.constant 1 : index
    %11 = arith.index_cast %5 : i32 to index
    %c0_4 = arith.constant 0 : index
    %12 = vector.load %arg1[%c1, %11, %c0_4] : memref<3x8x128xf32, #tpu.memory_space<vmem>>, vector<1x8x128xf32>
    %13 = vector.shape_cast %12 : vector<1x8x128xf32> to vector<8x128xf32>
    %cst_5 = arith.constant 1.000000e+00 : f32
    %14 = vector.broadcast %cst_5 : f32 to vector<8x128xf32>
    %15 = arith.mulf %13, %14 : vector<8x128xf32>
    %c2 = arith.constant 2 : index
    %16 = arith.index_cast %5 : i32 to index
    %c0_6 = arith.constant 0 : index
    %17 = vector.load %arg1[%c2, %16, %c0_6] : memref<3x8x128xf32, #tpu.memory_space<vmem>>, vector<1x8x128xf32>
    %18 = vector.shape_cast %17 : vector<1x8x128xf32> to vector<8x128xf32>
    %cst_7 = arith.constant 1.000000e-01 : f32
    %19 = vector.broadcast %cst_7 : f32 to vector<8x128xf32>
    %20 = arith.mulf %18, %19 : vector<8x128xf32>
    %21 = arith.mulf %20, %20 : vector<8x128xf32>
    %22 = math.absf %20 : vector<8x128xf32>
    %cst_8 = arith.constant 9.99999974E-6 : f32
    %23 = vector.broadcast %cst_8 : f32 to vector<8x128xf32>
    %24 = arith.addf %21, %23 : vector<8x128xf32>
    %cst_9 = arith.constant 9.99999974E-6 : f32
    %25 = vector.broadcast %cst_9 : f32 to vector<8x128xf32>
    %26 = arith.addf %22, %25 : vector<8x128xf32>
    %27 = tpu.reciprocal %24 {approx = true} : vector<8x128xf32> -> vector<8x128xf32>
    %28 = arith.mulf %24, %27 : vector<8x128xf32>
    %cst_10 = arith.constant 2.000000e+00 : f32
    %29 = vector.broadcast %cst_10 : f32 to vector<8x128xf32>
    %30 = arith.subf %29, %28 : vector<8x128xf32>
    %31 = arith.mulf %27, %30 : vector<8x128xf32>
    %32 = tpu.reciprocal %26 {approx = true} : vector<8x128xf32> -> vector<8x128xf32>
    %33 = arith.mulf %26, %32 : vector<8x128xf32>
    %cst_11 = arith.constant 2.000000e+00 : f32
    %34 = vector.broadcast %cst_11 : f32 to vector<8x128xf32>
    %35 = arith.subf %34, %33 : vector<8x128xf32>
    %36 = arith.mulf %32, %35 : vector<8x128xf32>
    %37 = math.sin %22 : vector<8x128xf32>
    %38 = arith.mulf %37, %36 : vector<8x128xf32>
    %39 = math.cos %22 : vector<8x128xf32>
    %cst_12 = arith.constant 1.000000e+00 : f32
    %40 = vector.broadcast %cst_12 : f32 to vector<8x128xf32>
    %41 = arith.subf %40, %39 : vector<8x128xf32>
    %42 = arith.mulf %41, %31 : vector<8x128xf32>
    %cst_13 = arith.constant 1.000000e+00 : f32
    %43 = vector.broadcast %cst_13 : f32 to vector<8x128xf32>
    %44 = arith.subf %43, %38 : vector<8x128xf32>
    %45 = arith.mulf %44, %31 : vector<8x128xf32>
    %46 = arith.mulf %42, %21 : vector<8x128xf32>
    %cst_14 = arith.constant 1.000000e+00 : f32
    %47 = vector.broadcast %cst_14 : f32 to vector<8x128xf32>
    %48 = arith.subf %47, %46 : vector<8x128xf32>
    %49 = arith.mulf %38, %20 : vector<8x128xf32>
    %50 = arith.mulf %45, %21 : vector<8x128xf32>
    %cst_15 = arith.constant 1.000000e+00 : f32
    %51 = vector.broadcast %cst_15 : f32 to vector<8x128xf32>
    %52 = arith.subf %51, %50 : vector<8x128xf32>
    %53 = arith.mulf %42, %20 : vector<8x128xf32>
    %54 = arith.mulf %52, %10 : vector<8x128xf32>
    %55 = arith.mulf %53, %15 : vector<8x128xf32>
    %56 = arith.subf %54, %55 : vector<8x128xf32>
    %57 = arith.mulf %53, %10 : vector<8x128xf32>
    %58 = arith.mulf %52, %15 : vector<8x128xf32>
    %59 = arith.addf %57, %58 : vector<8x128xf32>
    %c0_16 = arith.constant 0 : index
    %60 = arith.index_cast %5 : i32 to index
    %c0_17 = arith.constant 0 : index
    %61 = vector.load %arg2[%c0_16, %60, %c0_17] : memref<16x8x128xf32, #tpu.memory_space<vmem>>, vector<1x8x128xf32>
    %62 = vector.shape_cast %61 : vector<1x8x128xf32> to vector<8x128xf32>
    %63 = vector.shape_cast %48 : vector<8x128xf32> to vector<1x8x128xf32>
    tpu.vector_store %arg2[%c0_16, %60, %c0_17], %63 {strides = array<i32>} : memref<16x8x128xf32, #tpu.memory_space<vmem>>, vector<1x8x128xf32>,
    %cst_18 = arith.constant 0.000000e+00 : f32
    %64 = vector.broadcast %cst_18 : f32 to vector<8x128xf32>
    %65 = arith.subf %64, %49 : vector<8x128xf32>
    %c1_19 = arith.constant 1 : index
    %66 = arith.index_cast %5 : i32 to index
    %c0_20 = arith.constant 0 : index
    %67 = vector.load %arg2[%c1_19, %66, %c0_20] : memref<16x8x128xf32, #tpu.memory_space<vmem>>, vector<1x8x128xf32>
    %68 = vector.shape_cast %67 : vector<1x8x128xf32> to vector<8x128xf32>
    %69 = vector.shape_cast %65 : vector<8x128xf32> to vector<1x8x128xf32>
    tpu.vector_store %arg2[%c1_19, %66, %c0_20], %69 {strides = array<i32>} : memref<16x8x128xf32, #tpu.memory_space<vmem>>, vector<1x8x128xf32>,
    %c2_21 = arith.constant 2 : index
    %70 = arith.index_cast %5 : i32 to index
    %c0_22 = arith.constant 0 : index
    %71 = vector.load %arg2[%c2_21, %70, %c0_22] : memref<16x8x128xf32, #tpu.memory_space<vmem>>, vector<1x8x128xf32>
    %72 = vector.shape_cast %71 : vector<1x8x128xf32> to vector<8x128xf32>
    %73 = vector.shape_cast %0 : vector<8x128xf32> to vector<1x8x128xf32>
    tpu.vector_store %arg2[%c2_21, %70, %c0_22], %73 {strides = array<i32>} : memref<16x8x128xf32, #tpu.memory_space<vmem>>, vector<1x8x128xf32>,
    %c3 = arith.constant 3 : index
    %74 = arith.index_cast %5 : i32 to index
    %c0_23 = arith.constant 0 : index
    %75 = vector.load %arg2[%c3, %74, %c0_23] : memref<16x8x128xf32, #tpu.memory_space<vmem>>, vector<1x8x128xf32>
    %76 = vector.shape_cast %75 : vector<1x8x128xf32> to vector<8x128xf32>
    %77 = vector.shape_cast %56 : vector<8x128xf32> to vector<1x8x128xf32>
    tpu.vector_store %arg2[%c3, %74, %c0_23], %77 {strides = array<i32>} : memref<16x8x128xf32, #tpu.memory_space<vmem>>, vector<1x8x128xf32>,
    %c4 = arith.constant 4 : index
    %78 = arith.index_cast %5 : i32 to index
    %c0_24 = arith.constant 0 : index
    %79 = vector.load %arg2[%c4, %78, %c0_24] : memref<16x8x128xf32, #tpu.memory_space<vmem>>, vector<1x8x128xf32>
    %80 = vector.shape_cast %79 : vector<1x8x128xf32> to vector<8x128xf32>
    %81 = vector.shape_cast %49 : vector<8x128xf32> to vector<1x8x128xf32>
    tpu.vector_store %arg2[%c4, %78, %c0_24], %81 {strides = array<i32>} : memref<16x8x128xf32, #tpu.memory_space<vmem>>, vector<1x8x128xf32>,
    %c5 = arith.constant 5 : index
    %82 = arith.index_cast %5 : i32 to index
    %c0_25 = arith.constant 0 : index
    %83 = vector.load %arg2[%c5, %82, %c0_25] : memref<16x8x128xf32, #tpu.memory_space<vmem>>, vector<1x8x128xf32>
    %84 = vector.shape_cast %83 : vector<1x8x128xf32> to vector<8x128xf32>
    %85 = vector.shape_cast %48 : vector<8x128xf32> to vector<1x8x128xf32>
    tpu.vector_store %arg2[%c5, %82, %c0_25], %85 {strides = array<i32>} : memref<16x8x128xf32, #tpu.memory_space<vmem>>, vector<1x8x128xf32>,
    %c6 = arith.constant 6 : index
    %86 = arith.index_cast %5 : i32 to index
    %c0_26 = arith.constant 0 : index
    %87 = vector.load %arg2[%c6, %86, %c0_26] : memref<16x8x128xf32, #tpu.memory_space<vmem>>, vector<1x8x128xf32>
    %88 = vector.shape_cast %87 : vector<1x8x128xf32> to vector<8x128xf32>
    %89 = vector.shape_cast %0 : vector<8x128xf32> to vector<1x8x128xf32>
    tpu.vector_store %arg2[%c6, %86, %c0_26], %89 {strides = array<i32>} : memref<16x8x128xf32, #tpu.memory_space<vmem>>, vector<1x8x128xf32>,
    %c7 = arith.constant 7 : index
    %90 = arith.index_cast %5 : i32 to index
    %c0_27 = arith.constant 0 : index
    %91 = vector.load %arg2[%c7, %90, %c0_27] : memref<16x8x128xf32, #tpu.memory_space<vmem>>, vector<1x8x128xf32>
    %92 = vector.shape_cast %91 : vector<1x8x128xf32> to vector<8x128xf32>
    %93 = vector.shape_cast %59 : vector<8x128xf32> to vector<1x8x128xf32>
    tpu.vector_store %arg2[%c7, %90, %c0_27], %93 {strides = array<i32>} : memref<16x8x128xf32, #tpu.memory_space<vmem>>, vector<1x8x128xf32>,
    %c8 = arith.constant 8 : index
    %94 = arith.index_cast %5 : i32 to index
    %c0_28 = arith.constant 0 : index
    %95 = vector.load %arg2[%c8, %94, %c0_28] : memref<16x8x128xf32, #tpu.memory_space<vmem>>, vector<1x8x128xf32>
    %96 = vector.shape_cast %95 : vector<1x8x128xf32> to vector<8x128xf32>
    %97 = vector.shape_cast %0 : vector<8x128xf32> to vector<1x8x128xf32>
    tpu.vector_store %arg2[%c8, %94, %c0_28], %97 {strides = array<i32>} : memref<16x8x128xf32, #tpu.memory_space<vmem>>, vector<1x8x128xf32>,
    %c9 = arith.constant 9 : index
    %98 = arith.index_cast %5 : i32 to index
    %c0_29 = arith.constant 0 : index
    %99 = vector.load %arg2[%c9, %98, %c0_29] : memref<16x8x128xf32, #tpu.memory_space<vmem>>, vector<1x8x128xf32>
    %100 = vector.shape_cast %99 : vector<1x8x128xf32> to vector<8x128xf32>
    %101 = vector.shape_cast %0 : vector<8x128xf32> to vector<1x8x128xf32>
    tpu.vector_store %arg2[%c9, %98, %c0_29], %101 {strides = array<i32>} : memref<16x8x128xf32, #tpu.memory_space<vmem>>, vector<1x8x128xf32>,
    %c10 = arith.constant 10 : index
    %102 = arith.index_cast %5 : i32 to index
    %c0_30 = arith.constant 0 : index
    %103 = vector.load %arg2[%c10, %102, %c0_30] : memref<16x8x128xf32, #tpu.memory_space<vmem>>, vector<1x8x128xf32>
    %104 = vector.shape_cast %103 : vector<1x8x128xf32> to vector<8x128xf32>
    %105 = vector.shape_cast %1 : vector<8x128xf32> to vector<1x8x128xf32>
    tpu.vector_store %arg2[%c10, %102, %c0_30], %105 {strides = array<i32>} : memref<16x8x128xf32, #tpu.memory_space<vmem>>, vector<1x8x128xf32>,
    %c11 = arith.constant 11 : index
    %106 = arith.index_cast %5 : i32 to index
    %c0_31 = arith.constant 0 : index
    %107 = vector.load %arg2[%c11, %106, %c0_31] : memref<16x8x128xf32, #tpu.memory_space<vmem>>, vector<1x8x128xf32>
    %108 = vector.shape_cast %107 : vector<1x8x128xf32> to vector<8x128xf32>
    %109 = vector.shape_cast %0 : vector<8x128xf32> to vector<1x8x128xf32>
    tpu.vector_store %arg2[%c11, %106, %c0_31], %109 {strides = array<i32>} : memref<16x8x128xf32, #tpu.memory_space<vmem>>, vector<1x8x128xf32>,
    %c12 = arith.constant 12 : index
    %110 = arith.index_cast %5 : i32 to index
    %c0_32 = arith.constant 0 : index
    %111 = vector.load %arg2[%c12, %110, %c0_32] : memref<16x8x128xf32, #tpu.memory_space<vmem>>, vector<1x8x128xf32>
    %112 = vector.shape_cast %111 : vector<1x8x128xf32> to vector<8x128xf32>
    %113 = vector.shape_cast %0 : vector<8x128xf32> to vector<1x8x128xf32>
    tpu.vector_store %arg2[%c12, %110, %c0_32], %113 {strides = array<i32>} : memref<16x8x128xf32, #tpu.memory_space<vmem>>, vector<1x8x128xf32>,
    %c13 = arith.constant 13 : index
    %114 = arith.index_cast %5 : i32 to index
    %c0_33 = arith.constant 0 : index
    %115 = vector.load %arg2[%c13, %114, %c0_33] : memref<16x8x128xf32, #tpu.memory_space<vmem>>, vector<1x8x128xf32>
    %116 = vector.shape_cast %115 : vector<1x8x128xf32> to vector<8x128xf32>
    %117 = vector.shape_cast %0 : vector<8x128xf32> to vector<1x8x128xf32>
    tpu.vector_store %arg2[%c13, %114, %c0_33], %117 {strides = array<i32>} : memref<16x8x128xf32, #tpu.memory_space<vmem>>, vector<1x8x128xf32>,
    %c14 = arith.constant 14 : index
    %118 = arith.index_cast %5 : i32 to index
    %c0_34 = arith.constant 0 : index
    %119 = vector.load %arg2[%c14, %118, %c0_34] : memref<16x8x128xf32, #tpu.memory_space<vmem>>, vector<1x8x128xf32>
    %120 = vector.shape_cast %119 : vector<1x8x128xf32> to vector<8x128xf32>
    %121 = vector.shape_cast %0 : vector<8x128xf32> to vector<1x8x128xf32>
    tpu.vector_store %arg2[%c14, %118, %c0_34], %121 {strides = array<i32>} : memref<16x8x128xf32, #tpu.memory_space<vmem>>, vector<1x8x128xf32>,
    %c15 = arith.constant 15 : index
    %122 = arith.index_cast %5 : i32 to index
    %c0_35 = arith.constant 0 : index
    %123 = vector.load %arg2[%c15, %122, %c0_35] : memref<16x8x128xf32, #tpu.memory_space<vmem>>, vector<1x8x128xf32>
    %124 = vector.shape_cast %123 : vector<1x8x128xf32> to vector<8x128xf32>
    %125 = vector.shape_cast %1 : vector<8x128xf32> to vector<1x8x128xf32>
    tpu.vector_store %arg2[%c15, %122, %c0_35], %125 {strides = array<i32>} : memref<16x8x128xf32, #tpu.memory_space<vmem>>, vector<1x8x128xf32>,
    %c1_i32_36 = arith.constant 1 : i32
    return
  }
  func.func @transform_0(%arg0: i32) -> (i32, i32, i32) {
    %c0_i32 = arith.constant 0 : i32
    %c0_i32_0 = arith.constant 0 : i32
    %c0_i32_1 = arith.constant 0 : i32
    return %c0_i32, %arg0, %c0_i32_0 : i32, i32, i32
  }
  func.func @transform_1(%arg0: i32) -> (i32, i32, i32) {
    %c0_i32 = arith.constant 0 : i32
    %c0_i32_0 = arith.constant 0 : i32
    %c0_i32_1 = arith.constant 0 : i32
    return %c0_i32, %arg0, %c0_i32_0 : i32, i32, i32
  }
}

</mosaic_0001>

<bundles_post_ra>
// kernel: tpu_custom_call.1
= control target key start
LH: loop header
LB: loop body
LE: loop exit
PB: predicated region body
PF: predicated region fallthrough
CT: control target
= control target key end

     0   :  { %6 = vsyncpa [#allocation3], 0  ;;  %s611_s0 = inlined_call_operand.hbm [shape: f32[3,8,128], index: 0, kind: input, shape index: {}]   ;;  %s612_s1 = inlined_call_operand.hbm [shape: f32[16,8,128], index: 1, kind: output, shape index: {}]  }
   0x1   :  { %7 = vsyncpa [#allocation4], 0  ;;  %s12_s8 = sshll.u32 %s611_s0, 4  ;;  %s521_s9 = smov [#allocation2]   ;;  %s13_s8 = int_to_ptr.hbm [resolvable:$true] %s12_s8 }
   0x2   :  { %s14_s10 = sshll.u32 %s521_s9, 4  ;;  %s522_s11 = smov 128   ;;  %s15_s10 = int_to_ptr.vmem [resolvable:$true] %s14_s10 }
   0x3   :  { %s523_s12 = smov 8  }
   0x4   :  { %20 = dma.hbm_to_vmem [thread:$0]  %s13_s8, 384, %s15_s10, [#allocation3], %s522_s11, %s522_s11, %s523_s12  }
   0x5   :  { %517 = dma.done.wait [#allocation3], 384  }
   0x6   :  { %518 = vsyncadd [#allocation3], 4294966912  ;;  %v31_v0 = vld [vmem:[#allocation2 + $0x10] sm:$0xff]  ;;  %v524_v13 = vmov 683565275   ;;  %s533_s0 = smov [#allocation5]  }
   0x7   :  { %v550_v1 = vmul.f32 0.1, %v31_v0  ;;  %v525_v15 = vmov 2475754826   ;;  %v526_v17 = vmov 2131351028  }
   0x8   :  { %v527_v19 = vmov 2102212464   ;;  %v528_v21 = vmov 920167782   ;;  %v529_v27 = vmov 1326507024  }
   0x9   :  { %v553_v2 = vand.u32 2147483647, %v550_v1  ;;  %s414_s13 = sshll.u32 %s533_s0, 4  ;;  %s416_s16 = sshll.u32 %s612_s1, 4  ;;  %s415_s13 = int_to_ptr.vmem [resolvable:$true] %s414_s13  ;;  %s417_s16 = int_to_ptr.hbm [resolvable:$true] %s416_s16 }
   0xb   :  { %v47_v3 = vand.u32 2139095040, %v553_v2  ;;  %v51_v7 = vand.u32 8388607, %v553_v2  ;;  %vm46_vm12 = vcmp.le.f32.partialorder %v553_v2, 0.7853982 }
   0xd   :  { %v48_v4 = vshrl.u32 %v47_v3, 23  ;;  %v52_v10 = vor.u32 8388608, %v51_v7  ;;  %v530_v3 = vmov 0  }
   0xf   :  { %v446_v5 = vadd.s32 4294967169, %v48_v4  ;;  %v560_v29 = vshll.u32 %v52_v10, 8 }
  0x11   :  { %v54_v6 = vadd.s32 1, %v446_v5  ;;  %v93_v41 = vand.u32 65535, %v560_v29  ;;  %v94_v42 = vshrl.u32 %v560_v29, 16 }
  0x13   :  { %vm55_vm0 = vcmp.gt.s32.totalorder %v54_v6, 0 }
  0x14   :  { %v56_v8 = vsel %vm55_vm0, %v54_v6, 0 }
  0x15   :  { %v58_v9 = vand.u32 31, %v56_v8  ;;  %v557_v11 = vshrl.u32 %v56_v8, 5 }
  0x17   :  { %v59_v12 = vsub.s32 32, %v58_v9  ;;  %v61_v14 = vshll.u32 %v524_v13, %v58_v9  ;;  %v64_v16 = vshll.u32 %v525_v15, %v58_v9  ;;  %v67_v18 = vshll.u32 %v526_v17, %v58_v9 }
  0x18   :  { %v70_v20 = vshll.u32 %v527_v19, %v58_v9  ;;  %v73_v22 = vshll.u32 %v528_v21, %v58_v9  ;;  %vm76_vm1 = vcmp.lt.s32.totalorder %v557_v11, 1  ;;  %vm79_vm2 = vcmp.lt.s32.totalorder %v557_v11, 4 }
  0x19   :  { %v62_v23 = vshrl.u32 %v525_v15, %v59_v12  ;;  %v65_v24 = vshrl.u32 %v526_v17, %v59_v12  ;;  %v68_v25 = vshrl.u32 %v527_v19, %v59_v12  ;;  %v71_v26 = vshrl.u32 %v528_v21, %v59_v12 }
  0x1a   :  { %v74_v28 = vshrl.u32 %v529_v27, %v59_v12  ;;  %vm78_vm3 = vcmp.lt.s32.totalorder %v557_v11, 3  ;;  %vm77_vm4 = vcmp.lt.s32.totalorder %v557_v11, 2  ;;  %v60_v49 = vshrl.u32 %v524_v13, %v59_v12 }
  0x1b   :  { %v63_v30 = vor.u32 %v62_v23, %v61_v14  ;;  %v66_v31 = vor.u32 %v65_v24, %v64_v16  ;;  %v69_v32 = vor.u32 %v68_v25, %v67_v18  ;;  %v72_v33 = vor.u32 %v71_v26, %v70_v20 }
  0x1c   :  { %v75_v34 = vor.u32 %v74_v28, %v73_v22 }
  0x1d   :  { %v84_v35 = vsel %vm76_vm1, %v63_v30, %v66_v31  ;;  %v88_v36 = vsel %vm76_vm1, %v66_v31, %v69_v32  ;;  %v85_v37 = vsel %vm79_vm2, %v72_v33, 920167782  ;;  %v80_v62 = vsel %vm76_vm1, %v60_v49, %v63_v30 }
  0x1e   :  { %v89_v38 = vsel %vm79_vm2, %v75_v34, 1326507024  ;;  %v86_v39 = vsel %vm78_vm3, %v69_v32, %v85_v37  ;;  %v81_v0 = vsel %vm79_vm2, %v69_v32, 2102212464  ;;  %v36_v49 = vadd.f32 1e-05, %v553_v2 }
  0x1f   :  { %v90_v40 = vsel %vm78_vm3, %v72_v33, %v89_v38  ;;  %v87_v43 = vsel %vm77_vm4, %v84_v35, %v86_v39  ;;  %v82_v13 = vsel %vm78_vm3, %v66_v31, %v81_v0  ;;  %v532_v0 = vmov 1.0  }
  0x20   :  { %v91_v44 = vsel %vm77_vm4, %v88_v36, %v90_v40  ;;  %v117_v47 = vand.u32 65535, %v87_v43  ;;  %v118_v48 = vshrl.u32 %v87_v43, 16  ;;  %v83_v21 = vsel %vm77_vm4, %v80_v62, %v82_v13  ;;  %394 = vst [vmem:[#allocation5 + $0x50] sm:$0xff] %v532_v0 }
  0x21   :  { %v95_v45 = vand.u32 65535, %v91_v44  ;;  %v96_v46 = vshrl.u32 %v91_v44, 16  ;;  %v137_v25 = vmul.u32 %v560_v29, %v83_v21  ;;  %465 = vrcp.f32 %v36_v49  ;;  %409 = vst [vmem:[#allocation5 + $0x78] sm:$0xff] %v532_v0 }
  0x22   :  { %v119_v53 = vmul.u32 %v117_v47, %v93_v41  ;;  %v120_v54 = vmul.u32 %v118_v48, %v93_v41  ;;  %v121_v55 = vmul.u32 %v117_v47, %v94_v42  ;;  %v122_v59 = vmul.u32 %v118_v48, %v94_v42 }
  0x23   :  { %v97_v50 = vmul.u32 %v95_v45, %v93_v41  ;;  %v98_v51 = vmul.u32 %v96_v46, %v93_v41  ;;  %v99_v52 = vmul.u32 %v95_v45, %v94_v42  ;;  %v100_v56 = vmul.u32 %v96_v46, %v94_v42 }
  0x24   :  { %v123_v60 = vshll.u32 %v120_v54, 16  ;;  %v125_v61 = vshll.u32 %v121_v55, 16  ;;  %v124_v10 = vshrl.u32 %v120_v54, 16  ;;  %v126_v17 = vshrl.u32 %v121_v55, 16 }
  0x25   :  { %v101_v57 = vshll.u32 %v98_v51, 16  ;;  %v103_v58 = vshll.u32 %v99_v52, 16  ;;  %v102_v6 = vshrl.u32 %v98_v51, 16  ;;  %v104_v14 = vshrl.u32 %v99_v52, 16 }
  0x26   :  { %vm127_vm6 = vc.u32 %v119_v53, %v123_v60  ;;  %v129_v5 = vadd.s32 %v123_v60, %v119_v53  ;;  %v594_v48 = vmul.f32 %v550_v1, %v550_v1  ;;  %v531_v52 = vmov 0.0  }
  0x27   :  { %vm105_vm5 = vc.u32 %v97_v50, %v101_v57  ;;  %v107_v63 = vadd.s32 %v101_v57, %v97_v50  ;;  %v128_v8 = vsel %vm127_vm6, 1, %v530_v3  ;;  %370 = vst [vmem:[#allocation5 + $0x10] sm:$0xff] %v531_v52  ;;  %vm185_vm3 = vweird.f32 %v553_v2 }
  0x28   :  { %v106_v4 = vsel %vm105_vm5, 1, %v530_v3  ;;  %v130_v12 = vadd.s32 %v128_v8, %v122_v59  ;;  %vm131_vm8 = vc.u32 %v129_v5, %v125_v61  ;;  %v133_v20 = vadd.s32 %v129_v5, %v125_v61  ;;  %382 = vst [vmem:[#allocation5 + $0x30] sm:$0xff] %v531_v52  ;;  %v466_v61 = vpop.eup %465 }
  0x29   :  { %v108_v7 = vadd.s32 %v106_v4, %v100_v56  ;;  %vm109_vm7 = vc.u32 %v107_v63, %v103_v58  ;;  %v132_v16 = vsel %vm131_vm8, 1, %v530_v3  ;;  %v35_v53 = vadd.f32 1e-05, %v594_v48  ;;  %388 = vst [vmem:[#allocation5 + $0x40] sm:$0xff] %v531_v52 }
  0x2a   :  { %v110_v9 = vsel %vm109_vm7, 1, %v530_v3  ;;  %v134_v18 = vadd.s32 %v132_v16, %v130_v12  ;;  %391 = vst [vmem:[#allocation5 + $0x48] sm:$0xff] %v531_v52 }
  0x2b   :  { %v112_v15 = vadd.s32 %v110_v9, %v108_v7  ;;  %397 = vst [vmem:[#allocation5 + $0x58] sm:$0xff] %v531_v52  ;;  %467 = vrcp.f32 %v35_v53 }
  0x2c   :  { %v135_v22 = vadd.s32 %v134_v18, %v124_v10  ;;  %400 = vst [vmem:[#allocation5 + $0x60] sm:$0xff] %v531_v52 }
  0x2d   :  { %v113_v19 = vadd.s32 %v112_v15, %v102_v6  ;;  %403 = vst [vmem:[#allocation5 + $0x68] sm:$0xff] %v531_v52  ;;  %v42_v6 = vmul.f32 %v466_v61, %v36_v49 }
  0x2e   :  { %v136_v24 = vadd.s32 %v135_v22, %v126_v17  ;;  %406 = vst [vmem:[#allocation5 + $0x70] sm:$0xff] %v531_v52 }
  0x2f   :  { %v114_v23 = vadd.s32 %v113_v19, %v104_v14  ;;  %v43_v15 = vsub.f32 2.0, %v42_v6 }
  0x30   :  { %v140_v26 = vadd.s32 1, %v136_v24 }
  0x31   :  { %vm139_vm9 = vc.u32 %v114_v23, %v133_v20  ;;  %v138_v11 = vadd.s32 %v133_v20, %v114_v23  ;;  %v468_v8 = vpop.eup %467  ;;  %v44_v22 = vmul.f32 %v466_v61, %v43_v15 }
  0x32   :  { %v141_v27 = vsel %vm139_vm9, %v140_v26, %v136_v24  ;;  %v38_v14 = vmul.f32 %v468_v8, %v35_v53 }
  0x33   :  { %v142_v28 = vadd.s32 %v141_v27, %v137_v25 }
  0x34   :  { %v39_v21 = vsub.f32 2.0, %v38_v14 }
  0x35   :  { %v143_v30 = vadd.s32 536870912, %v142_v28 }
  0x37   :  { %v144_v31 = vshrl.u32 %v143_v30, 30  ;;  %v40_v30 = vmul.f32 %v468_v8, %v39_v21 }
  0x39   :  { %v145_v32 = vshll.u32 %v144_v31, 30  ;;  %v169_v55 = vsel %vm46_vm12, 0, %v144_v31 }
  0x3a   :  { %v186_v60 = vadd.s32 3, %v169_v55  ;;  %v339_v5 = vand.u32 3, %v169_v55 }
  0x3b   :  { %v146_v33 = vsub.s32 %v142_v28, %v145_v32 }
  0x3c   :  { %v187_v7 = vand.u32 3, %v186_v60  ;;  %vm344_vm13 = vcmp.eq.s32.totalorder %v339_v5, 2  ;;  %vm340_vm15 = vcmp.lt.s32.totalorder %v339_v5, 2  ;;  %vm341_vm0 = vcmp.eq.s32.totalorder %v339_v5, 0 }
  0x3d   :  { %vm147_vm10 = vcmp.lt.s32.totalorder %v146_v33, 0  ;;  %v148_v34 = vsub.s32 0, %v146_v33 }
  0x3e   :  { %vm192_vm14 = vcmp.eq.s32.totalorder %v187_v7, 2  ;;  %vm189_vm1 = vcmp.eq.s32.totalorder %v187_v7, 0  ;;  %vm188_vm2 = vcmp.lt.s32.totalorder %v187_v7, 2 }
  0x3f   :  { %v149_v35 = vsel %vm147_vm10, %v148_v34, %v146_v33 }
  0x40   :  { %v150_v36 = vclz %v149_v35 }
  0x42   :  { %v447_v37 = vadd.s32 4294967294, %v150_v36 }
  0x44   :  { %vm448_vm11 = vcmp.lt.s32.totalorder %v447_v37, 0 }
  0x45   :  { %v153_v38 = vsel %vm448_vm11, 0, %v447_v37 }
  0x46   :  { %v154_v39 = vsub.s32 32, %v153_v38  ;;  %v155_v40 = vshll.u32 %v146_v33, %v153_v38  ;;  %v158_v41 = vsub.s32 4294967266, %v153_v38  ;;  %v25_v38 = vld [vmem:[#allocation2] sm:$0xff] }
  0x48   :  { %v156_v29 = vshrl.u32 %v138_v11, %v154_v39  ;;  %v159_v42 = vadd.s32 127, %v158_v41  ;;  %v28_v39 = vld [vmem:[#allocation2 + $0x8] sm:$0xff] }
  0x4a   :  { %v157_v43 = vor.u32 %v156_v29, %v155_v40  ;;  %v160_v44 = vshll.u32 %v159_v42, 23 }
  0x4c   :  { %v161_v45 = vor.u32 4788187, %v160_v44  ;;  %v164_v46 = vcvt.s32.f32 %v157_v43 }
  0x4e   :  { %v162_v47 = vand.u32 2147483647, %v161_v45 }
  0x50   :  { %v165_v50 = vmul.f32 %v164_v46, %v162_v47 }
  0x52   :  { %v168_v51 = vsel %vm46_vm12, %v553_v2, %v165_v50 }
  0x53   :  { %v170_v54 = vmul.f32 %v168_v51, %v168_v51 }
  0x55   :  { %v171_v56 = vmul.f32 -0.001358992, %v170_v54  ;;  %v178_v57 = vmul.f32 -0.00019511016, %v170_v54 }
  0x57   :  { %v172_v58 = vadd.f32 0.041655596, %v171_v56  ;;  %v179_v59 = vadd.f32 0.008332121, %v178_v57 }
  0x59   :  { %v173_v62 = vmul.f32 %v172_v58, %v170_v54  ;;  %v180_v63 = vmul.f32 %v179_v59, %v170_v54 }
  0x5b   :  { %v174_v3 = vadd.f32 -0.4999988, %v173_v62  ;;  %v181_v4 = vadd.f32 -0.16666654, %v180_v63 }
  0x5d   :  { %v175_v9 = vmul.f32 %v174_v3, %v170_v54  ;;  %v182_v10 = vmul.f32 %v181_v4, %v170_v54 }
  0x5f   :  { %v176_v12 = vadd.f32 1.0, %v175_v9  ;;  %v183_v13 = vadd.f32 1.0, %v182_v10 }
  0x61   :  { %v184_v16 = vmul.f32 %v183_v13, %v168_v51  ;;  %v193_v17 = vxor.u32 2147483648, %v176_v12 }
  0x63   :  { %v190_v18 = vxor.u32 2147483648, %v184_v16  ;;  %v346_v19 = vsel %vm344_vm13, %v193_v17, %v184_v16  ;;  %v194_v20 = vsel %vm192_vm14, %v193_v17, %v184_v16 }
  0x65   :  { %v343_v23 = vsel %vm341_vm0, %v176_v12, %v190_v18  ;;  %v191_v24 = vsel %vm189_vm1, %v176_v12, %v190_v18 }
  0x66   :  { %v347_v25 = vsel %vm340_vm15, %v343_v23, %v346_v19  ;;  %v195_v26 = vsel %vm188_vm2, %v191_v24, %v194_v20 }
  0x67   :  { %v348_v27 = vsel %vm185_vm3, nan, %v347_v25  ;;  %v196_v28 = vsel %vm185_vm3, nan, %v195_v26 }
  0x68   :  { %v349_v31 = vsub.f32 1.0, %v348_v27  ;;  %v197_v32 = vmul.f32 %v196_v28, %v44_v22 }
  0x6a   :  { %v350_v33 = vmul.f32 %v349_v31, %v40_v30  ;;  %v351_v34 = vsub.f32 1.0, %v197_v32  ;;  %v355_v35 = vmul.f32 %v197_v32, %v550_v1 }
  0x6c   :  { %v353_v36 = vmul.f32 %v350_v33, %v594_v48  ;;  %v366_v37 = vsub.f32 0.0, %v355_v35  ;;  %376 = vst [vmem:[#allocation5 + $0x20] sm:$0xff] %v355_v35  ;;  %v352_v11 = vmul.f32 %v351_v34, %v40_v30  ;;  %v358_v2 = vmul.f32 %v350_v33, %v550_v1 }
  0x6e   :  { %v354_v40 = vsub.f32 1.0, %v353_v36  ;;  %368 = vst [vmem:[#allocation5 + $0x8] sm:$0xff] %v366_v37  ;;  %v356_v41 = vmul.f32 %v352_v11, %v594_v48  ;;  %v360_v42 = vmul.f32 %v358_v2, %v28_v39  ;;  %v362_v43 = vmul.f32 %v358_v2, %v25_v38 }
  0x70   :  { %365 = vst [vmem:[#allocation5] sm:$0xff] %v354_v40  ;;  %v357_v29 = vsub.f32 1.0, %v356_v41 }
  0x71   :  { %379 = vst [vmem:[#allocation5 + $0x28] sm:$0xff] %v354_v40 }
  0x72   :  { %v359_v44 = vmul.f32 %v357_v29, %v25_v38  ;;  %v363_v45 = vmul.f32 %v357_v29, %v28_v39 }
  0x74   :  { %v361_v1 = vsub.f32 %v359_v44, %v360_v42  ;;  %v364_v46 = vadd.f32 %v363_v45, %v362_v43 }
  0x76   :  { %373 = vst [vmem:[#allocation5 + $0x18] sm:$0xff] %v361_v1 }
  0x77   :  { %385 = vst [vmem:[#allocation5 + $0x38] sm:$0xff] %v364_v46 }
  0x78   :  { %422 = dma.vmem_to_hbm [thread:$0]  %s415_s13, 2048, %s417_s16, [#allocation4], %s522_s11, %s522_s11, %s523_s12  }
  0x79   :  { %519 = dma.done.wait [#allocation4], 2048  }
  0x7a   :  { %520 = vsyncadd [#allocation4], 4294965248 }
  0x7b   :  { %427 = vsyncpa [#allocation3], 1 }
  0x7c   :  { %428 = vsyncpa [#allocation4], 1 }

</bundles_post_ra>
